<compile_context>
chip_gen: v7x
topology: tpu7x:2x2x1
jax: 0.10.0
libtpu: 0.0.40
codegen_flags: <defaults>
</compile_context>

<pallas_src>
import functools

import jax
import jax.numpy as jnp
from jax.experimental import pallas as pl
from jax.experimental.pallas import tpu as pltpu


def _round_up(n: int, m: int) -> int:
    return ((n + m - 1) // m) * m


def _se_gate_kernel(x_ref, w1t_ref, w2t_ref, gate_ref, acc_ref, *, inv_hw):
    # x_ref:    (1, c, hw_tile)   one batch row, one spatial tile
    # w1t_ref:  (c, hidden)       fc1.weight.T
    # w2t_ref:  (hidden, c)       fc2.weight.T
    # gate_ref: (1, 1, c)         sigmoid gate for this batch row
    # acc_ref:  (1, c) f32        running spatial sum (resident across hw tiles)
    k = pl.program_id(1)

    @pl.when(k == 0)
    def _init():
        acc_ref[...] = jnp.zeros_like(acc_ref)

    # Partial spatial sum, accumulated in f32 without materializing a full
    # f32 copy of the input tile.
    acc_ref[...] += jnp.sum(x_ref[...], axis=-1, dtype=jnp.float32)   # (1, c)

    @pl.when(k == pl.num_programs(1) - 1)
    def _finalize():
        # AdaptiveAvgPool2d(1): divide by the TRUE h*w (padded lanes are zero).
        y = acc_ref[...] * inv_hw                                     # (1, c)
        h = jnp.maximum(
            jnp.dot(y, w1t_ref[...].astype(jnp.float32),
                    preferred_element_type=jnp.float32), 0.0)         # (1, hidden)
        g = jax.nn.sigmoid(
            jnp.dot(h, w2t_ref[...].astype(jnp.float32),
                    preferred_element_type=jnp.float32))              # (1, c)
        gate_ref[...] = g.reshape(gate_ref.shape).astype(gate_ref.dtype)


def se_module_pallas(x, w1, w2, *, hw_tile=512):
    """x: (b, c, h, w) NCHW.  w1: (hidden, c), w2: (c, hidden) -- PyTorch Linear layout.

    Returns the PyTorch-equivalent y.view(b, c, 1, 1).expand_as(x)."""
    b, c, h, w = x.shape
    hw = h * w
    hidden = w1.shape[0]

    # Lane tile: multiple of 128, capped at hw_tile; pad hw up to a tile multiple.
    tile = min(hw_tile, _round_up(hw, 128))
    tile = _round_up(tile, 128)
    hw_pad = _round_up(hw, tile)

    x_flat = x.reshape(b, c, hw)
    if hw_pad != hw:
        x_flat = jnp.pad(x_flat, ((0, 0), (0, 0), (0, hw_pad - hw)))

    w1t = jnp.transpose(w1)   # (c, hidden)
    w2t = jnp.transpose(w2)   # (hidden, c)

    grid = (b, hw_pad // tile)
    kernel = functools.partial(_se_gate_kernel, inv_hw=1.0 / float(hw))

    itemsize = jnp.dtype(x.dtype).itemsize
    cost = pl.CostEstimate(
        flops=2 * b * c * hw + 4 * b * c * hidden,
        transcendentals=b * c,
        bytes_accessed=(b * c * hw + b * c) * itemsize
                       + (w1.size + w2.size) * jnp.dtype(w1.dtype).itemsize,
    )

    gate = pl.pallas_call(
        kernel,
        out_shape=jax.ShapeDtypeStruct((b, 1, c), x.dtype),
        grid_spec=pltpu.PrefetchScalarGridSpec(
            num_scalar_prefetch=0,
            grid=grid,
            in_specs=[
                pl.BlockSpec((1, c, tile), lambda i, k: (i, 0, k)),
                pl.BlockSpec((c, hidden), lambda i, k: (0, 0)),
                pl.BlockSpec((hidden, c), lambda i, k: (0, 0)),
            ],
            out_specs=pl.BlockSpec((1, 1, c), lambda i, k: (i, 0, 0)),
            scratch_shapes=[pltpu.VMEM((1, c), jnp.float32)],
        ),
        compiler_params=pltpu.CompilerParams(
            dimension_semantics=("parallel", "arbitrary")),
        cost_estimate=cost,
    )(x_flat, w1t, w2t)

    # y.view(b, c, 1, 1).expand_as(x) -- broadcast done by XLA in the wrapper so
    # the kernel never writes (b, c, h, w) of redundant data.
    gate_bc = gate[:, 0, :]                                        # (b, c)
    return jnp.broadcast_to(gate_bc[:, :, None, None], (b, c, h, w))


def se_module_ref(x, w1, w2):
    """Pure-JAX reference replicating the PyTorch forward."""
    y = jnp.mean(x.astype(jnp.float32), axis=(2, 3))               # (b, c)
    y = jnp.maximum(y @ w1.T.astype(jnp.float32), 0.0)             # (b, hidden)
    y = jax.nn.sigmoid(y @ w2.T.astype(jnp.float32))               # (b, c)
    return jnp.broadcast_to(y[:, :, None, None], x.shape).astype(x.dtype)


if __name__ == "__main__":
    # Small shapes consistent with the module (channels >= reduction).
    # H*W = 576 is deliberately NOT a multiple of 128 to exercise the padded,
    # multi-tile reduction path.
    B, C, H, W = 2, 64, 24, 24
    reduction = 16
    hidden = C // reduction  # 4

    key = jax.random.PRNGKey(0)
    kx, k1, k2 = jax.random.split(key, 3)

    x = jax.random.normal(kx, (B, C, H, W), dtype=jnp.float32)
    # PyTorch Linear layout: (out_features, in_features).
    w1 = jax.random.normal(k1, (hidden, C), dtype=jnp.float32) * (1.0 / jnp.sqrt(C))
    w2 = jax.random.normal(k2, (C, hidden), dtype=jnp.float32) * (1.0 / jnp.sqrt(hidden))

    out = jax.block_until_ready(se_module_pallas(x, w1, w2))
    ref = jax.block_until_ready(se_module_ref(x, w1, w2))

    assert out.shape == (B, C, H, W)
    assert jnp.allclose(out, ref, atol=1e-5, rtol=1e-5)

    print("KERNEL_OK")
</pallas_src>

<mosaic_0001>
module attributes {stable_mosaic.version = 11 : i64} {
  func.func @_se_gate_kernel(%arg0: i32, %arg1: i32, %arg2: memref<1x64x512xf32, #tpu.memory_space<vmem>>, %arg3: memref<64x4xf32, #tpu.memory_space<vmem>>, %arg4: memref<4x64xf32, #tpu.memory_space<vmem>>, %arg5: memref<1x1x64xf32, #tpu.memory_space<vmem>>, %arg6: memref<1x64xf32, #tpu.memory_space<vmem>>) attributes {dimension_semantics = [#tpu.dimension_semantics<parallel>, #tpu.dimension_semantics<arbitrary>], iteration_bounds = array<i64: 2, 2>, scalar_prefetch = 0 : i64, scratch_operands = 1 : i64, tpu.core_type = #tpu.core_type<tc>, window_params = [{transform_indices = @transform_0, window_bounds = array<i64: 1, 64, 512>}, {pipeline_mode = #tpu.pipeline_mode<synchronous>, transform_indices = @transform_1, window_bounds = array<i64: 64, 4>}, {pipeline_mode = #tpu.pipeline_mode<synchronous>, transform_indices = @transform_2, window_bounds = array<i64: 4, 64>}, {transform_indices = @transform_3, window_bounds = array<i64: 1, 1, 64>}]} {
    %c0_i32 = arith.constant 0 : i32
    %0 = arith.cmpi eq, %arg1, %c0_i32 : i32
    %1 = arith.extui %0 : i1 to i32
    %c0_i32_0 = arith.constant 0 : i32
    %2 = arith.cmpi ne, %1, %c0_i32_0 : i32
    scf.if %2 {
      %cst_8 = arith.constant 0.000000e+00 : f32
      %11 = vector.broadcast %cst_8 : f32 to vector<1x64xf32>
      %c0_9 = arith.constant 0 : index
      %c0_10 = arith.constant 0 : index
      %12 = vector.load %arg6[%c0_9, %c0_10] : memref<1x64xf32, #tpu.memory_space<vmem>>, vector<1x64xf32>
      tpu.vector_store %arg6[%c0_9, %c0_10], %11 {strides = array<i32>} : memref<1x64xf32, #tpu.memory_space<vmem>>, vector<1x64xf32>,
    } else {
    }
    %c0 = arith.constant 0 : index
    %c0_1 = arith.constant 0 : index
    %3 = vector.load %arg6[%c0, %c0_1] : memref<1x64xf32, #tpu.memory_space<vmem>>, vector<1x64xf32>
    %c0_2 = arith.constant 0 : index
    %c0_3 = arith.constant 0 : index
    %c0_4 = arith.constant 0 : index
    %4 = vector.load %arg2[%c0_2, %c0_3, %c0_4] : memref<1x64x512xf32, #tpu.memory_space<vmem>>, vector<1x64x512xf32>
    %cst = arith.constant dense<0.000000e+00> : vector<1x64xf32>
    %5 = vector.multi_reduction <add>, %4, %cst [2] : vector<1x64x512xf32> to vector<1x64xf32>
    %6 = arith.addf %3, %5 : vector<1x64xf32>
    %c0_5 = arith.constant 0 : index
    %c0_6 = arith.constant 0 : index
    %7 = vector.load %arg6[%c0_5, %c0_6] : memref<1x64xf32, #tpu.memory_space<vmem>>, vector<1x64xf32>
    tpu.vector_store %arg6[%c0_5, %c0_6], %6 {strides = array<i32>} : memref<1x64xf32, #tpu.memory_space<vmem>>, vector<1x64xf32>,
    %c1_i32 = arith.constant 1 : i32
    %8 = arith.cmpi eq, %arg1, %c1_i32 : i32
    %9 = arith.extui %8 : i1 to i32
    %c0_i32_7 = arith.constant 0 : i32
    %10 = arith.cmpi ne, %9, %c0_i32_7 : i32
    scf.if %10 {
      %c0_8 = arith.constant 0 : index
      %c0_9 = arith.constant 0 : index
      %11 = vector.load %arg6[%c0_8, %c0_9] : memref<1x64xf32, #tpu.memory_space<vmem>>, vector<1x64xf32>
      %cst_10 = arith.constant 0.00173611112 : f32
      %12 = vector.broadcast %cst_10 : f32 to vector<1x64xf32>
      %13 = arith.mulf %11, %12 : vector<1x64xf32>
      %c0_11 = arith.constant 0 : index
      %c0_12 = arith.constant 0 : index
      %14 = vector.load %arg3[%c0_11, %c0_12] : memref<64x4xf32, #tpu.memory_space<vmem>>, vector<64x4xf32>
      %cst_13 = arith.constant dense<0.000000e+00> : vector<1x4xf32>
      %15 = tpu.matmul %13, %14, %cst_13 {dimension_numbers = #tpu.dot_dimension_numbers<[1], [0], [0], [1], [0, 0, 1, 1], [], []>} : vector<1x64xf32>, vector<64x4xf32>, vector<1x4xf32> -> vector<1x4xf32>
      %cst_14 = arith.constant 0.000000e+00 : f32
      %16 = vector.broadcast %cst_14 : f32 to vector<1x4xf32>
      %17 = arith.maximumf %15, %16 : vector<1x4xf32>
      %c0_15 = arith.constant 0 : index
      %c0_16 = arith.constant 0 : index
      %18 = vector.load %arg4[%c0_15, %c0_16] : memref<4x64xf32, #tpu.memory_space<vmem>>, vector<4x64xf32>
      %cst_17 = arith.constant dense<0.000000e+00> : vector<1x64xf32>
      %19 = tpu.matmul %17, %18, %cst_17 {dimension_numbers = #tpu.dot_dimension_numbers<[1], [0], [0], [1], [0, 0, 1, 1], [], []>} : vector<1x4xf32>, vector<4x64xf32>, vector<1x64xf32> -> vector<1x64xf32>
      %20 = arith.negf %19 : vector<1x64xf32>
      %21 = math.exp %20 : vector<1x64xf32>
      %cst_18 = arith.constant 1.000000e+00 : f32
      %22 = vector.broadcast %cst_18 : f32 to vector<1x64xf32>
      %23 = arith.addf %22, %21 : vector<1x64xf32>
      %24 = arith.divf %22, %23 : vector<1x64xf32>
      %25 = vector.shape_cast %24 : vector<1x64xf32> to vector<1x1x64xf32>
      %c0_19 = arith.constant 0 : index
      %c0_20 = arith.constant 0 : index
      %c0_21 = arith.constant 0 : index
      %26 = vector.load %arg5[%c0_19, %c0_20, %c0_21] : memref<1x1x64xf32, #tpu.memory_space<vmem>>, vector<1x1x64xf32>
      tpu.vector_store %arg5[%c0_19, %c0_20, %c0_21], %25 {strides = array<i32>} : memref<1x1x64xf32, #tpu.memory_space<vmem>>, vector<1x1x64xf32>,
    } else {
    }
    return
  }
  func.func @transform_0(%arg0: i32, %arg1: i32) -> (i32, i32, i32) {
    %c0_i32 = arith.constant 0 : i32
    %c0_i32_0 = arith.constant 0 : i32
    return %arg0, %c0_i32, %arg1 : i32, i32, i32
  }
  func.func @transform_1(%arg0: i32, %arg1: i32) -> (i32, i32) {
    %c0_i32 = arith.constant 0 : i32
    %c0_i32_0 = arith.constant 0 : i32
    %c0_i32_1 = arith.constant 0 : i32
    return %c0_i32, %c0_i32_0 : i32, i32
  }
  func.func @transform_2(%arg0: i32, %arg1: i32) -> (i32, i32) {
    %c0_i32 = arith.constant 0 : i32
    %c0_i32_0 = arith.constant 0 : i32
    %c0_i32_1 = arith.constant 0 : i32
    return %c0_i32, %c0_i32_0 : i32, i32
  }
  func.func @transform_3(%arg0: i32, %arg1: i32) -> (i32, i32, i32) {
    %c0_i32 = arith.constant 0 : i32
    %c0_i32_0 = arith.constant 0 : i32
    %c0_i32_1 = arith.constant 0 : i32
    return %arg0, %c0_i32, %c0_i32_0 : i32, i32, i32
  }
}

</mosaic_0001>

<bundles_post_ra>
// kernel: tpu_custom_call.1
= control target key start
LH: loop header
LB: loop body
LE: loop exit
PB: predicated region body
PF: predicated region fallthrough
CT: control target
= control target key end

     0   :  { %8 = vsyncpa [#allocation4], 0  ;;  %s2112_s0 = inlined_call_operand.hbm [shape: f32[2,64,1024], index: 0, kind: input, shape index: {}]   ;;  %s2113_s1 = inlined_call_operand.vmem [shape: f32[64,4], index: 1, kind: input, shape index: {}]   ;;  %s2114_s2 = inlined_call_operand.vmem [shape: f32[4,64], index: 2, kind: input, shape index: {}]   ;;  %s2115_s3 = inlined_call_operand.hbm [shape: f32[2,1,64], index: 3, kind: output, shape index: {}]  }
   0x1   :  { %10 = vsyncpa [#allocation4 + $0x1], 0 }
   0x2   :  { %11 = vsyncpa [#allocation5], 0 }
   0x3   :  { %13 = vsyncpa [#allocation5 + $0x1], 0  ;;  %s1673_s12 = smov 0   ;;  %s1675_s13 = smov 0  }
   0x4   :  { %s1677_s14 = smov 0   ;;  %s1679_s15 = smov 0  }
   0x5   :  { %s1681_s16 = smov 0   ;;  %s1683_s17 = smov 0  }
   0x6   :  { %s1685_s18 = smov 0   ;;  %s1687_s19 = smov 0  }
   0x7   :  { %s1689_s20 = smov 0   ;;  %s1691_s21 = smov 0  }
   0x8   :  { %s1693_s22 = smov 0  }
   0x9 LB: > { %s1305_s23 = sadd.s32 4294967295, %s1640_s22   ;;  %s1306_s24 = sadd.s32 4294967294, %s1640_s22   ;;  %s1640_s22 = sphi %s1693_s22, %s19_s22   ;;  %s1636_s21 = sphi %s1691_s21, %s2142_s21   ;;  %s1632_s20 = sphi %s1689_s20, %s2141_s20   ;;  %s1628_s19 = sphi %s1687_s19, %s2140_s19   ;;  %s1624_s18 = sphi %s1685_s18, %s2139_s18   ;;  %s1620_s17 = sphi %s1683_s17, %s2138_s17   ;;  %s1616_s16 = sphi %s1681_s16, %s2137_s16   ;;  %s1612_s15 = sphi %s1679_s15, %s2136_s15   ;;  %s1608_s14 = sphi %s1677_s14, %s2135_s14   ;;  %s1604_s13 = sphi %s1675_s13, %s2134_s13   ;;  %s1600_s12 = sphi %s1673_s12, %s2133_s12  }
   0xa   : > { %s28_s25 = sadd.s32 1, %s1632_s20  ;;  %s31_s26 = sadd.s32 1, %s1636_s21 }
   0xb   : > { %p29_p0 = scmp.ge.s32.totalorder %s28_s25, 2  ;;  %s40_s27 = sadd.s32 1, %s1620_s17 }
   0xc   : > { %p47_p1 = scmp.ne.s32.totalorder %s1620_s17, %s1616_s16  ;;  %p48_p2 = scmp.eq.s32.totalorder %s1640_s22, 0 }
   0xd   : > { %s2144_s25 = smov (%p29_p0, %s28_s25), 0  ;;  %s2146_s26 = smov (!%p29_p0, %s31_s26), %s1636_s21 }
   0xe   : > { %2119 = sst [smem:[#allocation9_spill]] %s2144_s25  ;;  %s36_s28 = ssub.s32 %s1632_s20, %s2144_s25 }
   0xf   : > { %p1739_p3 = por %p48_p2, %p47_p1  ;;  %p33_p4 = scmp.ge.s32.totalorder %s2146_s26, 2 }
  0x10   : > { %p53_p5 = scmp.ne.s32.totalorder %s1616_s16, %s1612_s15  ;;  %p54_p6 = scmp.eq.s32.totalorder %s1305_s23, 0 }
  0x11   : > { %s108_s30 = sadd.s32 1, %s1608_s14  ;;  %s2148_s26 = smov (%p33_p4, %s2146_s26), 0 }
  0x12   : > { %2121 = sst [smem:[#allocation10_spill]] %s2148_s26  ;;  %p1747_p7 = por %p54_p6, %p53_p5 }
  0x13   : > { %p118_p8 = scmp.ne.s32.totalorder %s1608_s14, %s1604_s13  ;;  %s35_s5 = ssub.s32 %s1636_s21, %s2148_s26 }
  0x14   : > { %p119_p9 = scmp.eq.s32.totalorder %s1305_s23, 3  ;;  %s37_s6 = sor.u32 %s36_s28, %s35_s5 }
  0x15   : > { %p106_p10 = scmp.eq.s32.totalorder %s35_s5, 0  ;;  %p38_p11 = scmp.eq.s32.totalorder %s37_s6, 0 }
  0x16   : > { %p1755_p12 = por %p119_p9, %p118_p8  ;;  %p124_p13 = scmp.ne.s32.totalorder %s1604_s13, %s1600_s12 }
  0x17   : > { %s1760_s8 = scalar_select %p106_p10, %s1608_s14, %s108_s30  }
  0x18   : > { %s2123_s7 = scalar_select %p1755_p12, 1, 0 }
  0x19   : > { %s1763_s9 = scalar_select %p38_p11, %s1620_s17, %s40_s27  }
  0x1a   : > { %p125_p0 = scmp.eq.s32.totalorder %s1306_s24, 3  ;;  %p1383_p1 = scmp.lt.s32.totalorder %s1640_s22, 4 }
  0x1b   : > { %2124 = sst [smem:[#allocation11_spill]] %s1763_s9  ;;  %s151_s11 = sand.u32 1, %s1620_s17  }
  0x1c   : > { %p1768_p2 = por %p125_p0, %p124_p13  ;;  %s1309_s15 = sshll.u32 %s151_s11, 8 }
  0x1d   : > { %s1310_s23 = sshll.u32 %s1632_s20, 2  ;;  %s1311_s28 = sshll.u32 %s1636_s21, 6 }
  0x1e   : > { %s2125_s10 = scalar_select %p1768_p2, 1, 0 }
  0x1f   : > { %s155_s5 = scalar_lea.vmem [#allocation3], %s1309_s15  ;;  %s161_s26 = sadd.s32 %s1311_s28, %s1310_s23 }
  0x20   : > { %s164_s6 = sshll.u32 %s155_s5, 4  ;;  %s1312_s30 = sshll.u32 %s161_s26, 7  ;;  %s1775_s6 = int_to_ptr.vmem [resolvable:$true] %s164_s6 }
  0x21   : > { %p1779_p4 = pnand %p1383_p1, %p1739_p3  ;;  %s1786_s9 = scalar_lea.hbm %s2112_s0, %s1312_s30 }
  0x22   : > { %s1789_s15 = scalar_lea.sflag [#allocation4], %s151_s11  ;;  %s1488_s26 = scalar_lea.hbm %s1786_s9, 4096 }
  0x23   : > { %p1489_p6 = scmp.ne.s32.totalorder %s1786_s9, %s1488_s26  ;;  %p1490_p3 = pneg %p1779_p4 }
  0x24   : > { %s1493_s23 = scalar_lea.hbm %s2112_s0, 16384  ;;  %p1494_p10 = scmp.lt.u32.totalorder %s1786_s9, %s2112_s0 }
  0x25   : > { %p1491_p8 = pnand %p1490_p3, %p1489_p6  ;;  %p1495_p11 = scmp.lt.u32.totalorder %s1493_s23, %s1488_s26 }
  0x26   : > { %p1497_p0 = scmp.lt.u32.totalorder %s1488_s26, %s1786_s9 }
  0x27   : > { %p1492_p9 = pneg %p1491_p8  ;;  %p1496_p13 = por %p1495_p11, %p1494_p10 }
  0x29   : > { %p1498_p1 = por %p1497_p0, %p1496_p13 }
  0x2b   : > { %p1499_p5 = pnand %p1498_p1, %p1492_p9 }
  0x2d   : > { %1502 = shalt.err (!%p1499_p5)
}
  0x2e   : > { %s1503_s11 = scalar_lea.vmem %s1775_s6, 4096  ;;  %s1642_s30 = smov [#allocation3]  }
  0x2f   : > { %p1504_p6 = scmp.ne.s32.totalorder %s1775_s6, %s1503_s11  ;;  %s1508_s24 = sshll.u32 %s1642_s30, 4  ;;  %s1509_s24 = int_to_ptr.vmem [resolvable:$false] %s1508_s24 }
  0x30   : > { %s1510_s25 = scalar_lea.vmem %s1509_s24, 8192  ;;  %p1511_p12 = scmp.lt.s32.totalorder %s1775_s6, %s1509_s24 }
  0x31   : > { %p1506_p8 = pnand %p1504_p6, %p1490_p3  ;;  %p1512_p10 = scmp.lt.s32.totalorder %s1510_s25, %s1503_s11 }
  0x33   : > { %p1507_p2 = pneg %p1506_p8  ;;  %p1513_p11 = por %p1512_p10, %p1511_p12 }
  0x35   : > { %p1514_p13 = pnand %p1513_p11, %p1507_p2 }
  0x37   : > { %1517 = shalt.err (!%p1514_p13)
}
  0x38   : > { %s1643_s26 = smov 1024   ;;  %s1644_s29 = smov 512  }
  0x39   : > { %s1645_s23 = smov 32   ;;  %p172_p5 = scmp.lt.s32.totalorder %s1640_s22, 5 }
  0x3a   : > { %1378 = dma.hbm_to_vmem [thread:$0]  (!%p1779_p4), %s1786_s9, 4096, %s1775_s6, %s1789_s15, %s1643_s26, %s1644_s29, %s1645_s23  }
  0x3b   : > { %p2127_p3 = scmp.ge.s32.totalorder %s1640_s22, 1 }
  0x3d   : > { %p173_p9 = pnand %p2127_p3, %p172_p5 }
  0x3e   : > { %s178_s28 = sand.u32 (!%p173_p9), 1, %s1616_s16  }
  0x3f   : > { %176 = sbr.rel (%p173_p9) target bundleno = 907 (0x38b), region = 32  ;;  %s1314_s5 = sshll.u32 (!%p173_p9), %s178_s28, 8 }
  0x40   : > { %s179_s11 = scalar_lea.sflag (!%p173_p9), [#allocation4], %s178_s28  ;;  %s1821_s30 = scalar_lea.vmem (!%p173_p9), [#allocation3], %s1314_s5 }
  0x46   : > { %1591 = dma.done.wait (%p1747_p7), %s179_s11, 4096  }
  0x47   : > { %1593 = vsyncadd (%p1747_p7), %s179_s11, 4294963200  ;;  %s202_s27 = sand.u32 1, %s1604_s13   ;;  %p1315_p12 = scmp.ne.s32.totalorder %s1624_s18, 0 }
  0x48   : > { %s1830_s9 = scalar_lea.vmem [#allocation6], %s202_s27  ;;  %vm209_vm0 = vcmask (!%p1315_p12), 516096   ;;  %v1646_v0 = vmov (!%p1315_p12), 0.0  }
  0x49   : > { %208 = sbr.rel (%p1315_p12) target bundleno = 80 (0x50), region = 40  ;;  %210 = vst.msk [vmem:[#allocation2] sm:$0x1] (!%p1315_p12), %vm209_vm0, %v1646_v0 }
  0x50 PF: > { %v212_v1 = vld [vmem:[%s1821_s30] sm:$0xff]  ;;  %v213_v2 = vld [vmem:[%s1821_s30 + $0x8] sm:$0xff]  ;;  %v214_v3 = vld [vmem:[%s1821_s30 + $0x10] sm:$0xff]  ;;  %v1647_v57 = vmov 0   ;;  %v292_v58 = vlaneseq  ;;  %v1648_v59 = vmov 1966171168  }
  0x51   : > { %v244_v4 = vadd.f32 %v213_v2, %v212_v1  ;;  %v216_v5 = vld [vmem:[%s1821_s30 + $0x20] sm:$0xff]  ;;  %v217_v6 = vld [vmem:[%s1821_s30 + $0x28] sm:$0xff]  ;;  %v215_v7 = vld [vmem:[%s1821_s30 + $0x18] sm:$0xff]  ;;  %1482 = vset.pattern.permute.xlu0 %v1647_v57  ;;  %1483 = vset.pattern.permute.xlu1 %v1647_v57  ;;  %v553_v60 = vunpack.c.l.s4 %v1648_v59  ;;  %vm975_vm1 = vcmask 130112   ;;  %vm982_vm2 = vcmask 195712   ;;  %p1316_p7 = scmp.ne.s32.totalorder %s1624_s18, 1 }
  0x52   : > { %v218_v8 = vld [vmem:[%s1821_s30 + $0x30] sm:$0xff]  ;;  %v249_v9 = vadd.f32 %v217_v6, %v216_v5  ;;  %v220_v10 = vld [vmem:[%s1821_s30 + $0x40] sm:$0xff]  ;;  %v219_v12 = vld [vmem:[%s1821_s30 + $0x38] sm:$0xff]  ;;  %v1866_v61 = vshrl.u32 %v292_v58, 7  ;;  %vm989_vm3 = vcmask 261312   ;;  %vm996_vm4 = vcmask 326912  }
  0x53   : > { %v245_v11 = vadd.f32 %v244_v4, %v214_v3  ;;  %v221_v13 = vld [vmem:[%s1821_s30 + $0x48] sm:$0xff]  ;;  %v222_v14 = vld [vmem:[%s1821_s30 + $0x50] sm:$0xff]  ;;  %v224_v17 = vld [vmem:[%s1821_s30 + $0x60] sm:$0xff]  ;;  %v554_v62 = vunpack.c.0.s8 %v553_v60  ;;  %vm1003_vm5 = vcmask 392512   ;;  %vm1010_vm6 = vcmask 458112  }
  0x54   : > { %v250_v15 = vadd.f32 %v249_v9, %v218_v8  ;;  %v254_v16 = vadd.f32 %v221_v13, %v220_v10  ;;  %v225_v18 = vld [vmem:[%s1821_s30 + $0x68] sm:$0xff]  ;;  %v226_v19 = vld [vmem:[%s1821_s30 + $0x70] sm:$0xff]  ;;  %v223_v21 = vld [vmem:[%s1821_s30 + $0x58] sm:$0xff]  ;;  %v1869_v63 = vsub.s32 0, %v1866_v61  ;;  %v1872_v0 = vsub.s32 1, %v1866_v61 }
  0x55   : > { %v246_v20 = vadd.f32 %v245_v11, %v215_v7  ;;  %v259_v22 = vadd.f32 %v225_v18, %v224_v17  ;;  %v228_v23 = vld [vmem:[%s1821_s30 + $0x80] sm:$0xff]  ;;  %v229_v24 = vld [vmem:[%s1821_s30 + $0x88] sm:$0xff]  ;;  %v227_v26 = vld [vmem:[%s1821_s30 + $0x78] sm:$0xff]  ;;  %v1875_v1 = vsub.s32 2, %v1866_v61  ;;  %v1878_v2 = vsub.s32 3, %v1866_v61 }
  0x56   : > { %v255_v25 = vadd.f32 %v254_v16, %v222_v14  ;;  %v230_v27 = vld [vmem:[%s1821_s30 + $0x90] sm:$0xff]  ;;  %v264_v28 = vadd.f32 %v229_v24, %v228_v23  ;;  %v232_v29 = vld [vmem:[%s1821_s30 + $0xa0] sm:$0xff]  ;;  %v251_v30 = vadd.f32 %v250_v15, %v219_v12  ;;  %v231_v32 = vld [vmem:[%s1821_s30 + $0x98] sm:$0xff]  ;;  %v1881_v3 = vsub.s32 4, %v1866_v61 }
  0x57   : > { %247 = vadd.xlane.f32.xlu0 %v246_v20  ;;  %v260_v31 = vadd.f32 %v259_v22, %v226_v19  ;;  %v233_v33 = vld [vmem:[%s1821_s30 + $0xa8] sm:$0xff]  ;;  %v234_v34 = vld [vmem:[%s1821_s30 + $0xb0] sm:$0xff]  ;;  %v236_v38 = vld [vmem:[%s1821_s30 + $0xc0] sm:$0xff]  ;;  %v1884_v4 = vsub.s32 5, %v1866_v61  ;;  %v1887_v5 = vsub.s32 6, %v1866_v61  ;;  %v1890_v6 = vsub.s32 7, %v1866_v61 }
  0x58   : > { %v256_v35 = vadd.f32 %v255_v25, %v223_v21  ;;  %v265_v36 = vadd.f32 %v264_v28, %v230_v27  ;;  %v269_v37 = vadd.f32 %v233_v33, %v232_v29  ;;  %v237_v39 = vld [vmem:[%s1821_s30 + $0xc8] sm:$0xff]  ;;  %v238_v40 = vld [vmem:[%s1821_s30 + $0xd0] sm:$0xff]  ;;  %v240_v42 = vld [vmem:[%s1821_s30 + $0xe0] sm:$0xff]  ;;  %v1893_v8 = vsub.s32 %v554_v62, %v1866_v61 }
  0x59   : > { %v274_v41 = vadd.f32 %v237_v39, %v236_v38  ;;  %v241_v43 = vld [vmem:[%s1821_s30 + $0xe8] sm:$0xff]  ;;  %v261_v44 = vadd.f32 %v260_v31, %v227_v26  ;;  %v235_v48 = vld [vmem:[%s1821_s30 + $0xb8] sm:$0xff]  ;;  %v242_v50 = vld [vmem:[%s1821_s30 + $0xf0] sm:$0xff]  ;;  %vm1017_vm7 = vcmask 523712   ;;  %vm1035_vm8 = vcmask 516096  }
  0x5a   : > { %257 = vadd.xlane.f32.xlu1 %v256_v35  ;;  %v270_v45 = vadd.f32 %v269_v37, %v234_v34  ;;  %v279_v46 = vadd.f32 %v241_v43, %v240_v42  ;;  %v266_v47 = vadd.f32 %v265_v36, %v231_v32  ;;  %v239_v51 = vld [vmem:[%s1821_s30 + $0xd8] sm:$0xff]  ;;  %vm1650_vm9 = vmmov (!%p1316_p7), 0  }
  0x5b   : > { %252 = vadd.xlane.f32.xlu0 %v251_v30  ;;  %v275_v49 = vadd.f32 %v274_v41, %v238_v40  ;;  %v243_v55 = vld [vmem:[%s1821_s30 + $0xf8] sm:$0xff]  ;;  %vm1051_vm10 = vcmask (!%p1316_p7), 523264   ;;  %vm1131_vm11 = vcmask (!%p1316_p7), 1043456   ;;  %vm1127_vm12 = vcmask (!%p1316_p7), 31744  }
  0x5c   : > { %v271_v52 = vadd.f32 %v270_v45, %v235_v48  ;;  %v280_v53 = vadd.f32 %v279_v46, %v242_v50 }
  0x5d   : > { %v276_v54 = vadd.f32 %v275_v49, %v239_v51 }
  0x5e   : > { %262 = vadd.xlane.f32.xlu1 %v261_v44  ;;  %v281_v56 = vadd.f32 %v280_v53, %v243_v55 }
  0x5f   : > { %267 = vadd.xlane.f32.xlu0 %v266_v47 }
  0x62   : > { %272 = vadd.xlane.f32.xlu1 %v271_v52 }
  0x63   : > { %277 = vadd.xlane.f32.xlu0 %v276_v54 }
  0x66   : > { %282 = vadd.xlane.f32.xlu1 %v281_v56 }
  0xe4   : > { %v248_v7 = vpop.xlane.xlu0 %247 }
  0xe5   : > { %v295_v9 = vrot.slane %v248_v7, %v1869_v63  ;;  %v299_v10 = vrot.slane %v248_v7, %v1872_v0  ;;  %v303_v11 = vrot.slane %v248_v7, %v1875_v1  ;;  %v307_v12 = vrot.slane %v248_v7, %v1878_v2 }
  0xe6   : > { %v311_v13 = vrot.slane %v248_v7, %v1881_v3  ;;  %v315_v14 = vrot.slane %v248_v7, %v1884_v4  ;;  %v319_v15 = vrot.slane %v248_v7, %v1887_v5  ;;  %v323_v16 = vrot.slane %v248_v7, %v1890_v6 }
  0xe7   : > { %v258_v17 = vpop.xlane.xlu1 %257  ;;  %v548_v18 = vcombine.low %v295_v9, %v299_v10  ;;  %v549_v19 = vcombine.low %v303_v11, %v307_v12 }
  0xe8   : > { %v253_v20 = vpop.xlane.xlu0 %252  ;;  %v550_v21 = vcombine.low %v311_v13, %v315_v14  ;;  %v551_v22 = vcombine.low %v319_v15, %v323_v16  ;;  %v359_v23 = vrot.slane %v258_v17, %v1869_v63  ;;  %v363_v24 = vrot.slane %v258_v17, %v1872_v0 }
  0xe9   : > { %v558_v25 = vrot.slane %v548_v18, %v1893_v8  ;;  %v565_v26 = vrot.slane %v549_v19, %v1893_v8  ;;  %v327_v27 = vrot.slane %v253_v20, %v1869_v63  ;;  %v331_v28 = vrot.slane %v253_v20, %v1872_v0 }
  0xea   : > { %v572_v29 = vrot.slane %v550_v21, %v1893_v8  ;;  %v579_v30 = vrot.slane %v551_v22, %v1893_v8  ;;  %v335_v31 = vrot.slane %v253_v20, %v1875_v1  ;;  %v339_v32 = vrot.slane %v253_v20, %v1878_v2 }
  0xeb   : > { %v580_v33 = vcombine.low %v558_v25, %v565_v26  ;;  %v343_v34 = vrot.slane %v253_v20, %v1881_v3  ;;  %v347_v35 = vrot.slane %v253_v20, %v1884_v4  ;;  %v351_v36 = vrot.slane %v253_v20, %v1887_v5  ;;  %v263_v45 = vpop.xlane.xlu1 %262 }
  0xec   : > { %v581_v37 = vcombine.low %v572_v29, %v579_v30  ;;  %v355_v38 = vrot.slane %v253_v20, %v1890_v6  ;;  %v597_v39 = vcombine.low %v327_v27, %v331_v28  ;;  %v598_v40 = vcombine.low %v335_v31, %v339_v32 }
  0xed   : > { %v588_v41 = vrot.slane %v580_v33, %v1893_v8  ;;  %v599_v42 = vcombine.low %v343_v34, %v347_v35  ;;  %v367_v43 = vrot.slane %v258_v17, %v1875_v1  ;;  %v371_v44 = vrot.slane %v258_v17, %v1878_v2 }
  0xee   : > { %v595_v46 = vrot.slane %v581_v37, %v1893_v8  ;;  %v600_v47 = vcombine.low %v351_v36, %v355_v38  ;;  %v607_v48 = vrot.slane %v597_v39, %v1893_v8  ;;  %v614_v49 = vrot.slane %v598_v40, %v1893_v8 }
  0xef   : > { %v621_v50 = vrot.slane %v599_v42, %v1893_v8  ;;  %v375_v51 = vrot.slane %v258_v17, %v1881_v3  ;;  %v379_v52 = vrot.slane %v258_v17, %v1884_v4  ;;  %v383_v53 = vrot.slane %v258_v17, %v1887_v5  ;;  %v273_v38 = vpop.xlane.xlu1 %272 }
  0xf0   : > { %v596_v54 = vcombine.low %v588_v41, %v595_v46  ;;  %v628_v55 = vrot.slane %v600_v47, %v1893_v8  ;;  %v629_v56 = vcombine.low %v607_v48, %v614_v49  ;;  %v387_v57 = vrot.slane %v258_v17, %v1890_v6  ;;  %v268_v17 = vpop.xlane.xlu0 %267 }
  0xf1   : > { %v646_v59 = vcombine.low %v359_v23, %v363_v24  ;;  %v647_v60 = vcombine.low %v367_v43, %v371_v44  ;;  %v648_v62 = vcombine.low %v375_v51, %v379_v52  ;;  %v391_v7 = vrot.slane %v263_v45, %v1869_v63 }
  0xf2   : > { %941 = vperm.xlu0 %1482, %v596_v54   ;;  %v630_v9 = vcombine.low %v621_v50, %v628_v55  ;;  %v637_v10 = vrot.slane %v629_v56, %v1893_v8  ;;  %v649_v11 = vcombine.low %v383_v53, %v387_v57  ;;  %v395_v12 = vrot.slane %v263_v45, %v1872_v0 }
  0xf3   : > { %v656_v13 = vrot.slane %v646_v59, %v1893_v8  ;;  %v663_v14 = vrot.slane %v647_v60, %v1893_v8  ;;  %v670_v15 = vrot.slane %v648_v62, %v1893_v8  ;;  %v399_v16 = vrot.slane %v263_v45, %v1875_v1 }
  0xf4   : > { %v644_v18 = vrot.slane %v630_v9, %v1893_v8  ;;  %v677_v19 = vrot.slane %v649_v11, %v1893_v8  ;;  %v403_v20 = vrot.slane %v263_v45, %v1878_v2  ;;  %v407_v21 = vrot.slane %v263_v45, %v1881_v3  ;;  %v278_v60 = vpop.xlane.xlu0 %277 }
  0xf5   : > { %v678_v22 = vcombine.low %v656_v13, %v663_v14  ;;  %v411_v23 = vrot.slane %v263_v45, %v1884_v4  ;;  %v415_v24 = vrot.slane %v263_v45, %v1887_v5  ;;  %v419_v25 = vrot.slane %v263_v45, %v1890_v6 }
  0xf6   : > { %v645_v26 = vcombine.low %v637_v10, %v644_v18  ;;  %v679_v27 = vcombine.low %v670_v15, %v677_v19  ;;  %v695_v28 = vcombine.low %v391_v7, %v395_v12  ;;  %v696_v29 = vcombine.low %v399_v16, %v403_v20 }
  0xf7   : > { %v686_v30 = vrot.slane %v678_v22, %v1893_v8  ;;  %v697_v31 = vcombine.low %v407_v21, %v411_v23  ;;  %v698_v32 = vcombine.low %v415_v24, %v419_v25  ;;  %v423_v33 = vrot.slane %v268_v17, %v1869_v63 }
  0xf8   : > { %944 = vperm.xlu1 %1483, %v645_v26   ;;  %v693_v34 = vrot.slane %v679_v27, %v1893_v8  ;;  %v705_v35 = vrot.slane %v695_v28, %v1893_v8  ;;  %v712_v36 = vrot.slane %v696_v29, %v1893_v8  ;;  %v427_v37 = vrot.slane %v268_v17, %v1872_v0 }
  0xf9   : > { %v719_v39 = vrot.slane %v697_v31, %v1893_v8  ;;  %v726_v40 = vrot.slane %v698_v32, %v1893_v8  ;;  %v431_v41 = vrot.slane %v268_v17, %v1875_v1  ;;  %v435_v42 = vrot.slane %v268_v17, %v1878_v2  ;;  %v283_v31 = vpop.xlane.xlu1 %282 }
  0xfa   : > { %v694_v43 = vcombine.low %v686_v30, %v693_v34  ;;  %v727_v44 = vcombine.low %v705_v35, %v712_v36  ;;  %v439_v45 = vrot.slane %v268_v17, %v1881_v3  ;;  %v443_v46 = vrot.slane %v268_v17, %v1884_v4 }
  0xfb   : > { %v728_v47 = vcombine.low %v719_v39, %v726_v40  ;;  %v447_v48 = vrot.slane %v268_v17, %v1887_v5  ;;  %v451_v49 = vrot.slane %v268_v17, %v1890_v6  ;;  %v744_v50 = vcombine.low %v423_v33, %v427_v37 }
  0xfc   : > { %947 = vperm.xlu1 %1483, %v694_v43   ;;  %v735_v51 = vrot.slane %v727_v44, %v1893_v8  ;;  %v745_v52 = vcombine.low %v431_v41, %v435_v42  ;;  %v746_v53 = vcombine.low %v439_v45, %v443_v46  ;;  %v455_v54 = vrot.slane %v273_v38, %v1869_v63 }
  0xfd   : > { %v742_v55 = vrot.slane %v728_v47, %v1893_v8  ;;  %v747_v56 = vcombine.low %v447_v48, %v451_v49  ;;  %v754_v57 = vrot.slane %v744_v50, %v1893_v8  ;;  %v459_v59 = vrot.slane %v273_v38, %v1872_v0 }
  0xfe   : > { %v761_v62 = vrot.slane %v745_v52, %v1893_v8  ;;  %v768_v7 = vrot.slane %v746_v53, %v1893_v8  ;;  %v463_v9 = vrot.slane %v273_v38, %v1875_v1  ;;  %v467_v10 = vrot.slane %v273_v38, %v1878_v2 }
  0xff   : > { %v743_v11 = vcombine.low %v735_v51, %v742_v55  ;;  %v775_v12 = vrot.slane %v747_v56, %v1893_v8  ;;  %v471_v13 = vrot.slane %v273_v38, %v1881_v3  ;;  %v475_v14 = vrot.slane %v273_v38, %v1884_v4 }
 0x100   : > { %v776_v15 = vcombine.low %v754_v57, %v761_v62  ;;  %v479_v16 = vrot.slane %v273_v38, %v1887_v5  ;;  %v483_v17 = vrot.slane %v273_v38, %v1890_v6  ;;  %v793_v18 = vcombine.low %v455_v54, %v459_v59 }
 0x101   : > { %950 = vperm.xlu1 %1483, %v743_v11   ;;  %v777_v19 = vcombine.low %v768_v7, %v775_v12  ;;  %v794_v20 = vcombine.low %v463_v9, %v467_v10  ;;  %v795_v21 = vcombine.low %v471_v13, %v475_v14  ;;  %v487_v22 = vrot.slane %v278_v60, %v1869_v63 }
 0x102   : > { %v784_v23 = vrot.slane %v776_v15, %v1893_v8  ;;  %v796_v24 = vcombine.low %v479_v16, %v483_v17  ;;  %v803_v25 = vrot.slane %v793_v18, %v1893_v8  ;;  %v491_v26 = vrot.slane %v278_v60, %v1872_v0 }
 0x103   : > { %v791_v27 = vrot.slane %v777_v19, %v1893_v8  ;;  %v810_v28 = vrot.slane %v794_v20, %v1893_v8  ;;  %v817_v29 = vrot.slane %v795_v21, %v1893_v8  ;;  %v495_v30 = vrot.slane %v278_v60, %v1875_v1 }
 0x104   : > { %v824_v32 = vrot.slane %v796_v24, %v1893_v8  ;;  %v499_v33 = vrot.slane %v278_v60, %v1878_v2  ;;  %v503_v34 = vrot.slane %v278_v60, %v1881_v3  ;;  %v507_v35 = vrot.slane %v278_v60, %v1884_v4 }
 0x105   : > { %v792_v36 = vcombine.low %v784_v23, %v791_v27  ;;  %v825_v37 = vcombine.low %v803_v25, %v810_v28  ;;  %v511_v38 = vrot.slane %v278_v60, %v1887_v5  ;;  %v515_v39 = vrot.slane %v278_v60, %v1890_v6 }
 0x106   : > { %v826_v40 = vcombine.low %v817_v29, %v824_v32  ;;  %v842_v41 = vcombine.low %v487_v22, %v491_v26  ;;  %v843_v42 = vcombine.low %v495_v30, %v499_v33  ;;  %v844_v43 = vcombine.low %v503_v34, %v507_v35 }
 0x107   : > { %953 = vperm.xlu1 %1483, %v792_v36   ;;  %v833_v44 = vrot.slane %v825_v37, %v1893_v8  ;;  %v845_v45 = vcombine.low %v511_v38, %v515_v39  ;;  %v519_v46 = vrot.slane %v283_v31, %v1869_v63  ;;  %v523_v47 = vrot.slane %v283_v31, %v1872_v0 }
 0x108   : > { %v840_v48 = vrot.slane %v826_v40, %v1893_v8  ;;  %v852_v49 = vrot.slane %v842_v41, %v1893_v8  ;;  %v859_v50 = vrot.slane %v843_v42, %v1893_v8  ;;  %v866_v51 = vrot.slane %v844_v43, %v1893_v8 }
 0x109   : > { %v873_v52 = vrot.slane %v845_v45, %v1893_v8  ;;  %v527_v53 = vrot.slane %v283_v31, %v1875_v1  ;;  %v531_v54 = vrot.slane %v283_v31, %v1878_v2  ;;  %v535_v55 = vrot.slane %v283_v31, %v1881_v3 }
 0x10a   : > { %v841_v56 = vcombine.low %v833_v44, %v840_v48  ;;  %v874_v63 = vcombine.low %v852_v49, %v859_v50  ;;  %v539_v0 = vrot.slane %v283_v31, %v1884_v4  ;;  %v543_v57 = vrot.slane %v283_v31, %v1887_v5 }
 0x10b   : > { %v875_v59 = vcombine.low %v866_v51, %v873_v52  ;;  %v547_v60 = vrot.slane %v283_v31, %v1890_v6  ;;  %v891_v62 = vcombine.low %v519_v46, %v523_v47  ;;  %v892_v7 = vcombine.low %v527_v53, %v531_v54 }
 0x10c   : > { %956 = vperm.xlu1 %1483, %v841_v56   ;;  %v882_v9 = vrot.slane %v874_v63, %v1893_v8  ;;  %v893_v10 = vcombine.low %v535_v55, %v539_v0  ;;  %v965_v20 = vand.u32 127, %v292_v58  ;;  %v211_v56 = vld [vmem:[#allocation2] sm:$0x1] }
 0x10d   : > { %v889_v1 = vrot.slane %v875_v59, %v1893_v8  ;;  %v894_v2 = vcombine.low %v543_v57, %v547_v60  ;;  %v901_v3 = vrot.slane %v891_v62, %v1893_v8  ;;  %v908_v11 = vrot.slane %v892_v7, %v1893_v8  ;;  %v1044_v57 = vld [vmem:[%s2113_s1 + $0x8] sm:$0xff] (!%p1316_p7)  ;;  %v1045_v59 = vld [vmem:[%s2113_s1 + $0x10] sm:$0xff] (!%p1316_p7)  ;;  %v1046_v62 = vld [vmem:[%s2113_s1 + $0x18] sm:$0xff] (!%p1316_p7) }
 0x10e   : > { %v915_v4 = vrot.slane %v893_v10, %v1893_v8  ;;  %v970_v22 = vadd.s32 4294967288, %v965_v20  ;;  %v977_v23 = vadd.s32 4294967280, %v965_v20  ;;  %v984_v24 = vadd.s32 4294967272, %v965_v20  ;;  %v1047_v10 = vld [vmem:[%s2113_s1 + $0x20] sm:$0xff] (!%p1316_p7) }
 0x10f   : > { %v890_v12 = vcombine.low %v882_v9, %v889_v1  ;;  %v922_v5 = vrot.slane %v894_v2, %v1893_v8  ;;  %v923_v13 = vcombine.low %v901_v3, %v908_v11  ;;  %v991_v25 = vadd.s32 4294967264, %v965_v20  ;;  %v1048_v1 = vld [vmem:[%s2113_s1 + $0x28] sm:$0xff] (!%p1316_p7)  ;;  %v1049_v3 = vld [vmem:[%s2113_s1 + $0x30] sm:$0xff] (!%p1316_p7)  ;;  %v1050_v11 = vld [vmem:[%s2113_s1 + $0x38] sm:$0xff] (!%p1316_p7) }
 0x110   : > { %v973_v26 = vsub.s32 %v970_v22, %v1866_v61  ;;  %v998_v27 = vadd.s32 4294967256, %v965_v20  ;;  %v980_v29 = vsub.s32 %v977_v23, %v1866_v61  ;;  %v1005_v30 = vadd.s32 4294967248, %v965_v20 }
 0x111   : > { %959 = vperm.xlu1 %1483, %v890_v12   ;;  %v924_v6 = vcombine.low %v915_v4, %v922_v5  ;;  %v931_v14 = vrot.slane %v923_v13, %v1893_v8  ;;  %v968_v31 = vsub.s32 %v965_v20, %v1866_v61  ;;  %v987_v32 = vsub.s32 %v984_v24, %v1866_v61  ;;  %v1126_v13 = vld [vmem:[%s2114_s2] sm:$0xf] (!%p1316_p7) }
 0x112   : > { %v994_v34 = vsub.s32 %v991_v25, %v1866_v61  ;;  %v1001_v35 = vsub.s32 %v998_v27, %v1866_v61  ;;  %v1012_v36 = vadd.s32 4294967240, %v965_v20  ;;  %v1008_v38 = vsub.s32 %v1005_v30, %v1866_v61 }
 0x113   : > { %v938_v15 = vrot.slane %v924_v6, %v1893_v8  ;;  %v1651_v7 = vmov (!%p1316_p7), 0.0   ;;  %v1363_v9 = vpack.c.bf16 (!%p1316_p7), %v1046_v62, %v1045_v59  ;;  %v1366_v2 = vpack.c.bf16 (!%p1316_p7), %v1048_v1, %v1047_v10 }
 0x114   : > { %v1015_v45 = vsub.s32 %v1012_v36, %v1866_v61  ;;  %v1043_v61 = vld [vmem:[%s2113_s1] sm:$0xff] (!%p1316_p7)  ;;  %1351 = vmatprep.mubr.msk.f32.mxu0 (!%p1316_p7), %vm1650_vm9, %v1651_v7  ;;  %1354 = vmatprep.subr.mxu1 (!%p1316_p7), %v1651_v7  ;;  %v1369_v4 = vpack.c.bf16 (!%p1316_p7), %v1050_v11, %v1049_v3 }
 0x115   : > { %v939_v16 = vcombine.low %v931_v14, %v938_v15  ;;  %v1360_v60 = vpack.c.bf16 (!%p1316_p7), %v1044_v57, %v1043_v61  ;;  %1356 = vmatprep.mubr.msk.f32.mxu1 (!%p1316_p7), %vm1650_vm9, %v1651_v7  ;;  %1355 = vmatpush3.msk.msra.mxu1 (!%p1316_p7), %vm1131_vm11, %v1126_v13 }
 0x117   : > { %962 = vperm.xlu1 %1483, %v939_v16  }
 0x171   : > { %v942_v33 = vpop.permute.xlu0 %941 }
 0x172   : > { %v969_v40 = vrot.slane %v942_v33, %v968_v31 }
 0x177   : > { %v945_v17 = vpop.permute.xlu1 %944 }
 0x178   : > { %v974_v58 = vrot.slane %v945_v17, %v973_v26 }
 0x17a   : > { %v976_v43 = vsel %vm975_vm1, %v974_v58, %v969_v40 }
 0x17b   : > { %v948_v18 = vpop.permute.xlu1 %947 }
 0x17c   : > { %v981_v37 = vrot.slane %v948_v18, %v980_v29 }
 0x17e   : > { %v983_v46 = vsel %vm982_vm2, %v981_v37, %v976_v43 }
 0x180   : > { %v951_v19 = vpop.permute.xlu1 %950 }
 0x181   : > { %v988_v41 = vrot.slane %v951_v19, %v987_v32 }
 0x183   : > { %v990_v48 = vsel %vm989_vm3, %v988_v41, %v983_v46 }
 0x186   : > { %v954_v21 = vpop.permute.xlu1 %953 }
 0x187   : > { %v995_v42 = vrot.slane %v954_v21, %v994_v34 }
 0x189   : > { %v997_v49 = vsel %vm996_vm4, %v995_v42, %v990_v48 }
 0x18b   : > { %v957_v28 = vpop.permute.xlu1 %956 }
 0x18c   : > { %v1002_v44 = vrot.slane %v957_v28, %v1001_v35 }
 0x18e   : > { %v1004_v51 = vsel %vm1003_vm5, %v1002_v44, %v997_v49 }
 0x190   : > { %v960_v39 = vpop.permute.xlu1 %959 }
 0x191   : > { %v1009_v47 = vrot.slane %v960_v39, %v1008_v38 }
 0x193   : > { %v1011_v53 = vsel %vm1010_vm6, %v1009_v47, %v1004_v51 }
 0x196   : > { %v963_v50 = vpop.permute.xlu1 %962 }
 0x197   : > { %v1016_v52 = vrot.slane %v963_v50, %v1015_v45 }
 0x199   : > { %v1018_v54 = vsel %vm1017_vm7, %v1016_v52, %v1011_v53 }
 0x19a   : > { %v1025_v55 = vrot.slane %v1018_v54, %v1893_v8  ;;  %1040 = sbr.rel (%p1316_p7) target bundleno = 882 (0x372), region = 44 }
 0x19c   : > { %v1032_v63 = vrot.slane %v1025_v55, %v1893_v8  ;;  %v1649_v8 = vmov (!%p1316_p7), 0.0|0.0  }
 0x19d   : > { %1359 = vmatprep.subr.bf16.mxu0 (!%p1316_p7), %v1649_v8 }
 0x19e   : > { %v1034_v0 = vadd.f32 %v1032_v63, %v211_v56  ;;  %1361 = vmatpush3.bf16.msra.mxu0 (!%p1316_p7), %v1360_v60 }
 0x19f   : > { %1362 = vmatprep.subr.bf16.mxu0 (!%p1316_p7), %v1649_v8 }
 0x1a0   : > { %1036 = vst.msk [vmem:[#allocation2] sm:$0x1] %vm1035_vm8, %v1034_v0 }
 0x1a2   : > { %1364 = vmatpush3.bf16.msra.mxu0 %v1363_v9 }
 0x1a3   : > { %1365 = vmatprep.subr.bf16.mxu0 %v1649_v8 }
 0x1a6   : > { %1367 = vmatpush3.bf16.msra.mxu0 %v1366_v2 }
 0x1a7   : > { %v1041_v12 = vld [vmem:[#allocation2] sm:$0x1]  ;;  %1368 = vmatprep.subr.bf16.mxu0 %v1649_v8 }
 0x1a8   : > { %v1042_v5 = vmul.f32 0.0017361111, %v1041_v12 }
 0x1aa   : > { %1370 = vmatpush3.bf16.msra.mxu0 %v1369_v4 }
 0x1ad   : > { %1352 = vmatmul.mubr.msk.f32.vlgmr.msra.gmra.mrb[0].mxu0 %vm1051_vm10, %v1042_v5 }
 0x280   : > { %v1121_v6 = vpop.f32.mrb[0].mxu0 }
 0x281   : > { %v1125_v14 = vmax.f32 %v1121_v6, 0.0  ;;  %v1353_v15 = vpop.f32.mrb[1].mxu0 }
 0x283   : > { %1357 = vmatmul.mubr.msk.f32.vlgmr.msra.gmra.mrb[0].mxu1 %vm1127_vm12, %v1125_v14 }
 0x356   : > { %v1201_v16 = vpop.f32.mrb[0].mxu1 }
 0x357   : > { %v1320_v17 = vmul.f32 -1.442695, %v1201_v16  ;;  %v1358_v18 = vpop.f32.mrb[1].mxu1 }
 0x359   : > { %1484 = vpow2.f32 %v1320_v17 }
 0x363   : > { %v1485_v19 = vpop.eup %1484 }
 0x364   : > { %v1208_v20 = vadd.f32 1.0, %v1485_v19 }
 0x366   : > { %1486 = vrcp.f32 %v1208_v20 }
 0x370   : > { %v1487_v21 = vpop.eup %1486 }
 0x371   : > { %1211 = vst.msk [vmem:[%s1830_s9] sm:$0x1] %vm1035_vm8, %v1487_v21 }
 0x372 PF: > { %s1321_s26 = sshll.u32 %s1628_s19, 4  ;;  %s1225_s28 = sshll.u32 %s1830_s9, 4  ;;  %s1226_s28 = int_to_ptr.vmem [resolvable:$true] %s1225_s28 }
 0x373   : > { %s2053_s18 = scalar_lea.hbm %s2115_s3, %s1321_s26  ;;  %s1213_s5 = scalar_lea.sflag [#allocation5], %s202_s27 }
 0x374   : > { %s1518_s11 = scalar_lea.vmem %s1226_s28, 16  ;;  %p2128_p4 = scmp.ne.s32.totalorder %s2123_s7, 0 }
 0x375   : > { %p1519_p2 = scmp.ne.s32.totalorder %s1226_s28, %s1518_s11  ;;  %s1652_s30 = smov [#allocation6]  }
 0x376   : > { %s1522_s4 = sshll.u32 %s1652_s30, 4  ;;  %s1523_s4 = int_to_ptr.vmem [resolvable:$false] %s1522_s4 }
 0x377   : > { %p1520_p0 = pnand %p1519_p2, %p2128_p4  ;;  %s1524_s6 = scalar_lea.vmem %s1523_s4, 32 }
 0x378   : > { %p1525_p6 = scmp.lt.s32.totalorder %s1226_s28, %s1523_s4  ;;  %p1526_p8 = scmp.lt.s32.totalorder %s1524_s6, %s1518_s11 }
 0x379   : > { %p1521_p1 = pneg %p1520_p0 }
 0x37a   : > { %p1527_p10 = por %p1526_p8, %p1525_p6 }
 0x37c   : > { %p1528_p11 = pnand %p1527_p10, %p1521_p1 }
 0x37e   : > { %1531 = shalt.err (!%p1528_p11)
}
 0x37f   : > { %s1532_s19 = scalar_lea.hbm %s2053_s18, 16  ;;  %s1536_s15 = scalar_lea.hbm %s2115_s3, 32 }
 0x380   : > { %p1533_p13 = scmp.ne.s32.totalorder %s2053_s18, %s1532_s19  ;;  %p1537_p9 = scmp.lt.u32.totalorder %s2053_s18, %s2115_s3 }
 0x381   : > { %p1538_p12 = scmp.lt.u32.totalorder %s1536_s15, %s1532_s19  ;;  %p1540_p2 = scmp.lt.u32.totalorder %s1532_s19, %s2053_s18 }
 0x382   : > { %p1534_p5 = pnand %p1533_p13, %p2128_p4 }
 0x383   : > { %p1539_p7 = por %p1538_p12, %p1537_p9 }
 0x384   : > { %p1535_p3 = pneg %p1534_p5 }
 0x385   : > { %p1541_p0 = por %p1540_p2, %p1539_p7 }
 0x387   : > { %p1542_p1 = pnand %p1541_p0, %p1535_p3 }
 0x389   : > { %1545 = shalt.err (!%p1542_p1)
}
 0x38a   : > { %1373 = dma.vmem_to_hbm [thread:$0]  (%p2128_p4), %s1226_s28, 16, %s2053_s18, %s1213_s5  }
 0x38b PF: > { %p1384_p6 = scmp.ge.s32.totalorder %s1640_s22, 2  ;;  %s1237_s26 = sand.u32 1, %s1600_s12  }
 0x38c   : > { %p2129_p8 = scmp.ne.s32.totalorder %s2125_s10, 0  ;;  %s1238_s29 = scalar_lea.sflag [#allocation5], %s1237_s26 }
 0x38e   : > { %p1380_p10 = pnand %p1384_p6, %p2129_p8 }
 0x390   : > { %1595 = dma.done.wait (!%p1380_p10), %s1238_s29, 16  }
 0x391   : > { %1597 = vsyncadd (!%p1380_p10), %s1238_s29, 4294967280  ;;  %s19_s22 = sadd.s32 1, %s1640_s22   ;;  %s2130_s7 = sld [smem:[#allocation11_spill]] }
 0x392   : > { %p16_p11 = scmp.ge.s32.totalorder %s19_s22, 6   ;;  %s2131_s23 = sld [smem:[#allocation9_spill]] }
 0x393   : > { %s2132_s28 = sld [smem:[#allocation10_spill]]  ;;  %s2133_s12 = smov %s1604_s13 }
 0x394   : > { %s2134_s13 = smov %s1608_s14  ;;  %s2135_s14 = smov %s1760_s8 }
 0x395   : > { %s2136_s15 = smov %s1616_s16  ;;  %s2137_s16 = smov %s1620_s17 }
 0x396   : > { %s2139_s18 = smov %s1632_s20  ;;  %s2140_s19 = smov %s1636_s21 }
 0x397   : > { %s2138_s17 = smov %s2130_s7  ;;  %18 = sbr.rel (!%p16_p11) target bundleno = 9 (0x9), region = 85 }
 0x398   : > { %s2141_s20 = smov %s2131_s23 }
 0x399   : > { %s2142_s21 = smov %s2132_s28 }
 0x39e   :  { %1242 = vsyncpa [#allocation4], 1 }
 0x39f   :  { %1244 = vsyncpa [#allocation4 + $0x1], 1 }
 0x3a0   :  { %1245 = vsyncpa [#allocation5], 1 }
 0x3a1   :  { %1247 = vsyncpa [#allocation5 + $0x1], 1 }

</bundles_post_ra>
